<compile_context>
chip_gen: v6e
topology: v6e:2x2x1
jax: 0.10.0
libtpu: 0.0.40
codegen_flags: <defaults>
</compile_context>

<pallas_src>
import jax
import jax.numpy as jnp
from jax.experimental import pallas as pl
from jax.experimental.pallas import tpu as pltpu

_EPS = 1e-5


def _vmem_limit_bytes() -> int:
    """Generation-aware scoped-VMEM limit (conservative if query unavailable)."""
    cap = 64 << 20  # assume the smallest physical VMEM (v7x per-TensorCore)
    try:
        info = pltpu.get_tpu_info()
        c = getattr(info, "vmem_capacity_bytes", None)
        if c:
            cap = int(c)
    except Exception:
        pass
    # Leave headroom for Mosaic internal scratch; never request more than 96 MiB.
    return int(min(cap * 3 // 4, 96 << 20))


# -----------------------------------------------------------------------------
# Main path: full (flattened) rows fit in VMEM -> one fused kernel.
# -----------------------------------------------------------------------------
def _inorm_rows_kernel(x_ref, o_ref):
    # x_ref / o_ref: (bc_tile, HW) tiles; each row is one (batch, channel) slice.
    x = x_ref[...]
    if x.dtype != jnp.float32:
        x = x.astype(jnp.float32)
    inv_n = jnp.float32(1.0 / x.shape[-1])
    mean = jnp.sum(x, axis=-1, keepdims=True) * inv_n
    d = x - mean
    var = jnp.sum(d * d, axis=-1, keepdims=True) * inv_n  # population variance
    inv_std = jax.lax.rsqrt(var + jnp.float32(_EPS))
    o_ref[...] = (d * inv_std).astype(o_ref.dtype)


def _choose_bc_tile(bc: int, rows_budget: int) -> int:
    """Rows per grid step: multiple of 8 (or the full dim), sized for pipelining."""
    if bc <= 8:
        return bc
    rows = max(8, (min(rows_budget, bc) // 8) * 8)
    if rows >= bc:
        # Everything fits in one tile -> keep several pipeline steps anyway so
        # DMA-in / compute / DMA-out overlap.
        if bc >= 64:
            rows = max(8, ((bc // 8) // 8) * 8)       # aim for ~8 steps
        elif bc >= 16:
            rows = max(8, ((bc // 2) // 8) * 8)       # at least 2 steps
        else:
            return bc                                  # 9..15 rows: single full-dim block
    # Prefer a multiple-of-8 divisor of bc (no ragged last block) when it is
    # not much smaller than the budget.
    r = rows
    while r >= 8 and bc % r != 0:
        r -= 8
    if r >= 8 and bc % r == 0 and r * 2 >= rows:
        rows = r

    # Prefer an even grid length (v7x shards the 'parallel' axis over 2 TCs).
    def nsteps(t):
        return -(-bc // t)

    if nsteps(rows) > 1 and nsteps(rows) % 2 == 1 and rows > 8:
        alt = rows - 8
        while alt >= 8 and alt * 2 >= rows:
            if nsteps(alt) % 2 == 0:
                rows = alt
                break
            alt -= 8
    return rows


# -----------------------------------------------------------------------------
# Fallback path: rows too wide for VMEM -> chunk H*W (moments pass + normalize).
# -----------------------------------------------------------------------------
def _instance_norm_chunked(x_flat, vmem_limit, bc_tile=None, hw_tile=None):
    BC, HW = x_flat.shape
    itemsize = jnp.dtype(x_flat.dtype).itemsize

    if bc_tile is None:
        bc_tile = BC if BC < 8 else 8
    if hw_tile is None:
        per_col = bc_tile * (4 * itemsize + 8)
        cols = max(128, int((vmem_limit // 2) // per_col))
        hw_tile = max(128, (cols // 128) * 128)
    hw_tile = min(hw_tile, HW)

    grid = (pl.cdiv(BC, bc_tile), pl.cdiv(HW, hw_tile))
    inv_n = 1.0 / HW
    needs_col_mask = (HW % hw_tile) != 0

    def moments_kernel(x_ref, mean_ref, rstd_ref, s1_ref, s2_ref):
        j = pl.program_id(1)

        @pl.when(j == 0)
        def _():
            s1_ref[...] = jnp.zeros_like(s1_ref)
            s2_ref[...] = jnp.zeros_like(s2_ref)

        x = x_ref[...]
        if x.dtype != jnp.float32:
            x = x.astype(jnp.float32)
        if needs_col_mask:
            col = jax.lax.broadcasted_iota(jnp.int32, x.shape, 1) + j * hw_tile
            x = jnp.where(col < HW, x, 0.0)
        s1_ref[...] += jnp.sum(x, axis=-1, keepdims=True)
        s2_ref[...] += jnp.sum(x * x, axis=-1, keepdims=True)

        @pl.when(j == pl.num_programs(1) - 1)
        def _():
            mean = s1_ref[...] * jnp.float32(inv_n)
            var = jnp.maximum(s2_ref[...] * jnp.float32(inv_n) - mean * mean, 0.0)
            mean_ref[...] = mean
            rstd_ref[...] = jax.lax.rsqrt(var + jnp.float32(_EPS))

    mean, rstd = pl.pallas_call(
        moments_kernel,
        out_shape=(jax.ShapeDtypeStruct((BC, 1), jnp.float32),
                   jax.ShapeDtypeStruct((BC, 1), jnp.float32)),
        grid_spec=pltpu.PrefetchScalarGridSpec(
            num_scalar_prefetch=0,
            grid=grid,
            in_specs=[pl.BlockSpec((bc_tile, hw_tile), lambda i, j: (i, j))],
            out_specs=[pl.BlockSpec((bc_tile, 1), lambda i, j: (i, 0)),
                       pl.BlockSpec((bc_tile, 1), lambda i, j: (i, 0))],
            scratch_shapes=[pltpu.VMEM((bc_tile, 1), jnp.float32),
                            pltpu.VMEM((bc_tile, 1), jnp.float32)],
        ),
        compiler_params=pltpu.CompilerParams(
            dimension_semantics=("parallel", "arbitrary"),
            vmem_limit_bytes=vmem_limit,
        ),
    )(x_flat)

    def normalize_kernel(x_ref, mean_ref, rstd_ref, o_ref):
        x = x_ref[...]
        if x.dtype != jnp.float32:
            x = x.astype(jnp.float32)
        o_ref[...] = ((x - mean_ref[...]) * rstd_ref[...]).astype(o_ref.dtype)

    return pl.pallas_call(
        normalize_kernel,
        out_shape=jax.ShapeDtypeStruct((BC, HW), x_flat.dtype),
        grid_spec=pltpu.PrefetchScalarGridSpec(
            num_scalar_prefetch=0,
            grid=grid,
            in_specs=[pl.BlockSpec((bc_tile, hw_tile), lambda i, j: (i, j)),
                      pl.BlockSpec((bc_tile, 1), lambda i, j: (i, 0)),
                      pl.BlockSpec((bc_tile, 1), lambda i, j: (i, 0))],
            out_specs=pl.BlockSpec((bc_tile, hw_tile), lambda i, j: (i, j)),
        ),
        compiler_params=pltpu.CompilerParams(
            dimension_semantics=("parallel", "parallel"),
            vmem_limit_bytes=vmem_limit,
        ),
    )(x_flat, mean, rstd)


# -----------------------------------------------------------------------------
# Dispatcher + public API
# -----------------------------------------------------------------------------
def _instance_norm_flat(x_flat):
    BC, HW = x_flat.shape
    itemsize = jnp.dtype(x_flat.dtype).itemsize
    vmem_limit = _vmem_limit_bytes()

    # Per-row VMEM footprint of the fused kernel: double-buffered input +
    # double-buffered output (native dtype) + ~2 full-tile f32 compute temps.
    per_row_bytes = HW * (4 * itemsize + 8)
    min_rows = BC if BC < 8 else 8
    if min_rows * per_row_bytes > int(vmem_limit * 0.9):
        # Even a minimal 8-row tile overflows scoped VMEM -> chunk H*W.
        return _instance_norm_chunked(x_flat, vmem_limit)

    target_tile_bytes = max(2 << 20, min(8 << 20, vmem_limit // 12))
    rows_budget = min(
        2048,
        max(min_rows, target_tile_bytes // max(1, HW * max(itemsize, 4))),
        max(min_rows, int(vmem_limit * 0.9) // per_row_bytes),
    )
    bc_tile = _choose_bc_tile(BC, int(rows_budget))
    grid = (pl.cdiv(BC, bc_tile),)  # ragged last block: OOB reads isolated per row,
                                    # OOB writes dropped -> no pad/slice copies.

    return pl.pallas_call(
        _inorm_rows_kernel,
        out_shape=jax.ShapeDtypeStruct((BC, HW), x_flat.dtype),
        grid_spec=pltpu.PrefetchScalarGridSpec(
            num_scalar_prefetch=0,
            grid=grid,
            in_specs=[pl.BlockSpec((bc_tile, HW), lambda i: (i, 0))],
            out_specs=pl.BlockSpec((bc_tile, HW), lambda i: (i, 0)),
        ),
        compiler_params=pltpu.CompilerParams(
            dimension_semantics=("parallel",),
            vmem_limit_bytes=vmem_limit,
        ),
        cost_estimate=pl.CostEstimate(
            flops=7 * BC * HW,
            transcendentals=BC,
            bytes_accessed=2 * BC * HW * itemsize,
        ),
    )(x_flat)


def instance_norm(x: jax.Array) -> jax.Array:
    """x: (B, C, H, W) -> instance-normalized (B, C, H, W) (no affine, eps=1e-5)."""
    B, C, H, W = x.shape
    x_flat = x.reshape(B * C, H * W)
    out_flat = _instance_norm_flat(x_flat)
    return out_flat.reshape(B, C, H, W)


class ModelNew:
    """JAX/Pallas analogue of the PyTorch ModelNew (instance norm, no affine)."""

    def __init__(self, num_features: int):
        # The PyTorch module takes num_features but has no learnable params.
        self.num_features = num_features
        self._forward = jax.jit(instance_norm)

    def __call__(self, x: jax.Array) -> jax.Array:
        return self._forward(x)


if __name__ == "__main__":
    key = jax.random.PRNGKey(0)

    def ref_fn(a):
        m = a.mean(axis=(2, 3), keepdims=True)
        v = a.var(axis=(2, 3), keepdims=True)  # population variance (unbiased=False)
        return (a - m) / jnp.sqrt(v + 1e-5)

    # Main fused path.
    B, C, H, W = 2, 4, 16, 16
    x = jax.random.normal(key, (B, C, H, W), dtype=jnp.float32)
    model = ModelNew(num_features=C)
    out = jax.block_until_ready(model(x))
    assert out.shape == (B, C, H, W)
    assert jnp.max(jnp.abs(out - ref_fn(x))) < 1e-4

    # Main path with a ragged last BC block (BC=12, bc_tile=8).
    x2 = jax.random.normal(jax.random.PRNGKey(1), (3, 4, 16, 16), dtype=jnp.float32)
    out2 = jax.block_until_ready(instance_norm(x2))
    assert jnp.max(jnp.abs(out2 - ref_fn(x2))) < 1e-4

    # HW-chunked fallback path, forced with small tiles (incl. ragged HW chunk).
    x3 = jax.random.normal(jax.random.PRNGKey(2), (2, 4, 16, 20), dtype=jnp.float32)
    out3_flat = jax.block_until_ready(
        _instance_norm_chunked(x3.reshape(8, 16 * 20), 32 << 20, bc_tile=8, hw_tile=128)
    )
    assert jnp.max(jnp.abs(out3_flat.reshape(x3.shape) - ref_fn(x3))) < 1e-4

    print("KERNEL_OK")
</pallas_src>

<mosaic_0001>
module attributes {stable_mosaic.version = 11 : i64} {
  func.func @_inorm_rows_kernel(%arg0: i32, %arg1: memref<8x256xf32, #tpu.memory_space<vmem>>, %arg2: memref<8x256xf32, #tpu.memory_space<vmem>>) attributes {dimension_semantics = [#tpu.dimension_semantics<parallel>], iteration_bounds = array<i64: 1>, scalar_prefetch = 0 : i64, scratch_operands = 0 : i64, tpu.core_type = #tpu.core_type<tc>, window_params = [{transform_indices = @transform_0, window_bounds = array<i64: 8, 256>}, {transform_indices = @transform_1, window_bounds = array<i64: 8, 256>}]} {
    %c0 = arith.constant 0 : index
    %c0_0 = arith.constant 0 : index
    %0 = vector.load %arg1[%c0, %c0_0] : memref<8x256xf32, #tpu.memory_space<vmem>>, vector<8x256xf32>
    %cst = arith.constant dense<0.000000e+00> : vector<8xf32>
    %1 = vector.multi_reduction <add>, %0, %cst [1] : vector<8x256xf32> to vector<8xf32>
    %2 = vector.shape_cast %1 : vector<8xf32> to vector<8x1xf32>
    %cst_1 = arith.constant 3.906250e-03 : f32
    %3 = vector.broadcast %cst_1 : f32 to vector<8x1xf32>
    %4 = arith.mulf %2, %3 : vector<8x1xf32>
    %5 = vector.broadcast %4 : vector<8x1xf32> to vector<8x256xf32>
    %6 = arith.subf %0, %5 : vector<8x256xf32>
    %7 = arith.mulf %6, %6 : vector<8x256xf32>
    %cst_2 = arith.constant dense<0.000000e+00> : vector<8xf32>
    %8 = vector.multi_reduction <add>, %7, %cst_2 [1] : vector<8x256xf32> to vector<8xf32>
    %9 = vector.shape_cast %8 : vector<8xf32> to vector<8x1xf32>
    %cst_3 = arith.constant 3.906250e-03 : f32
    %10 = vector.broadcast %cst_3 : f32 to vector<8x1xf32>
    %11 = arith.mulf %9, %10 : vector<8x1xf32>
    %cst_4 = arith.constant 9.99999974E-6 : f32
    %12 = vector.broadcast %cst_4 : f32 to vector<8x1xf32>
    %13 = arith.addf %11, %12 : vector<8x1xf32>
    %14 = math.rsqrt %13 : vector<8x1xf32>
    %15 = vector.broadcast %14 : vector<8x1xf32> to vector<8x256xf32>
    %16 = arith.mulf %6, %15 : vector<8x256xf32>
    %c0_5 = arith.constant 0 : index
    %c0_6 = arith.constant 0 : index
    %17 = vector.load %arg2[%c0_5, %c0_6] : memref<8x256xf32, #tpu.memory_space<vmem>>, vector<8x256xf32>
    tpu.vector_store %arg2[%c0_5, %c0_6], %16 {strides = array<i32>} : memref<8x256xf32, #tpu.memory_space<vmem>>, vector<8x256xf32>,
    return
  }
  func.func @transform_0(%arg0: i32) -> (i32, i32) {
    %c0_i32 = arith.constant 0 : i32
    %c0_i32_0 = arith.constant 0 : i32
    return %arg0, %c0_i32 : i32, i32
  }
  func.func @transform_1(%arg0: i32) -> (i32, i32) {
    %c0_i32 = arith.constant 0 : i32
    %c0_i32_0 = arith.constant 0 : i32
    return %arg0, %c0_i32 : i32, i32
  }
}

</mosaic_0001>

<bundles_post_ra>
// kernel: instance_norm.1
= control target key start
LH: loop header
LB: loop body
LE: loop exit
PB: predicated region body
PF: predicated region fallthrough
CT: control target
= control target key end

     0   :  { %s56_s0 = inlined_call_operand.vmem [shape: f32[8,256], index: 0, kind: input, shape index: {}]   ;;  %s57_s1 = inlined_call_operand.vmem [shape: f32[8,256], index: 1, kind: output, shape index: {}]  }
   0x1   :  { %v8_v0 = vld [vmem:[%s56_s0] sm:$0xff]  ;;  %v9_v1 = vld [vmem:[%s56_s0 + $0x8] sm:$0xff] }
   0x2   :  { %v10_v2 = vadd.f32 %v9_v1, %v8_v0 }
   0x4   :  { %11 = vadd.xlane.f32.xlu0 %v10_v2 }
  0x8d   :  { %v12_v3 = vpop.xlane.xlu0 %11 }
  0x8e   :  { %v13_v4 = vmul.f32 0.00390625, %v12_v3 }
  0x90   :  { %v14_v5 = vsub.f32 %v8_v0, %v13_v4  ;;  %v15_v6 = vsub.f32 %v9_v1, %v13_v4 }
  0x92   :  { %v16_v7 = vmul.f32 %v14_v5, %v14_v5  ;;  %v17_v8 = vmul.f32 %v15_v6, %v15_v6 }
  0x94   :  { %v18_v9 = vadd.f32 %v17_v8, %v16_v7 }
  0x96   :  { %19 = vadd.xlane.f32.xlu0 %v18_v9 }
 0x11f   :  { %v20_v10 = vpop.xlane.xlu0 %19 }
 0x120   :  { %v21_v11 = vmul.f32 0.00390625, %v20_v10 }
 0x122   :  { %v22_v12 = vadd.f32 1e-05, %v21_v11 }
 0x124   :  { %32 = vrsqrt.f32 %v22_v12 }
 0x131   :  { %v33_v13 = vpop.eup %32 }
 0x132   :  { %v24_v14 = vmul.f32 %v33_v13, %v14_v5  ;;  %v25_v15 = vmul.f32 %v33_v13, %v15_v6 }
 0x134   :  { %26 = vst [vmem:[%s57_s1] sm:$0xff] %v24_v14  ;;  %27 = vst [vmem:[%s57_s1 + $0x8] sm:$0xff] %v25_v15 }

</bundles_post_ra>
